<compile_context>
chip_gen: v6e
topology: v6e:2x2x1
jax: 0.10.0
libtpu: 0.0.40
codegen_flags: <defaults>
</compile_context>

<pallas_src>
import functools

import jax
import jax.numpy as jnp
import numpy as np
from jax.experimental import pallas as pl
from jax.experimental.pallas import tpu as pltpu

NEG_SLOPE = 0.01  # nn.LeakyReLU default


def _leaky(v):
    return jnp.where(v >= 0, v, NEG_SLOPE * v)


# --------------------------------------------------------------------------- #
# Kernel 1: bbox head + conv encoder (1x1 conv + folded BN + LeakyReLU) distance
# (grid-less, everything tiny and VMEM resident)
# --------------------------------------------------------------------------- #
def _conv_head_kernel(xf_ref, bbw_ref, bbb_ref,
                      sp_ref, qp_ref, cw_ref, cb_ref,
                      ps_ref, pq_ref,
                      bbox_ref, fgc_ref):
    # bbox regression head
    bbox_ref[...] = (jnp.dot(xf_ref[...], bbw_ref[...],
                             preferred_element_type=jnp.float32) + bbb_ref[...])

    # 1x1 conv (+ eval-mode BatchNorm folded) + LeakyReLU, as pixel-major matmuls
    cs = _leaky(jnp.dot(sp_ref[...], cw_ref[...],
                        preferred_element_type=jnp.float32) + cb_ref[...])     # [n*HW, 64]
    cq = _leaky(jnp.dot(qp_ref[...], cw_ref[...],
                        preferred_element_type=jnp.float32) + cb_ref[...])     # [B*HW, 64]

    # mean over the HW pixels of each sample via a pooling matmul (rows hold 1/HW)
    ms = jnp.dot(ps_ref[...], cs, preferred_element_type=jnp.float32)          # [n, 64]
    mq = jnp.dot(pq_ref[...], cq, preferred_element_type=jnp.float32)          # [B, 64]

    # (s - q).mean([C,H,W]).pow(2); the HW-mean already applied, now mean over C
    d = jnp.mean(ms[None, :, :] - mq[:, None, :], axis=2)                      # [B, n]
    fgc_ref[...] = d * d


# --------------------------------------------------------------------------- #
# Kernel 2: fused flatten/score encoders (K-tiled) + bg head + distances + metric
# --------------------------------------------------------------------------- #
def _encoder_metric_kernel(sup_ref, qry_ref, w1_ref, b1_ref,
                           efw2_ref, efb2_ref, esw2_ref, esb2_ref,
                           xf_ref, bgw_ref, bgb_ref,
                           fgc_ref, dw0_ref, dw1_ref, dw2_ref, scl_ref,
                           dwf_ref, dwb_ref, db_ref,
                           o_ref,
                           hs_acc, hq_acc, *, hid):
    k = pl.program_id(0)

    @pl.when(k == 0)
    def _():
        hs_acc[...] = jnp.zeros_like(hs_acc)
        hq_acc[...] = jnp.zeros_like(hq_acc)

    # fused first layers of encoder_flatten (cols :hid) and encoder_score (cols hid:)
    w1 = w1_ref[...]                                                  # [tk, 2*hid] bf16
    hs_acc[...] += jnp.dot(sup_ref[...].astype(jnp.bfloat16), w1,
                           preferred_element_type=jnp.float32)
    hq_acc[...] += jnp.dot(qry_ref[...].astype(jnp.bfloat16), w1,
                           preferred_element_type=jnp.float32)

    @pl.when(k == pl.num_programs(0) - 1)
    def _():
        hs = hs_acc[...] + b1_ref[...]                                # [n, 2*hid]
        hq = hq_acc[...] + b1_ref[...]                                # [B, 2*hid]

        efw2 = efw2_ref[...].astype(jnp.float32)                      # [hid, 64]
        esw2 = esw2_ref[...].astype(jnp.float32)                      # [hid, way]

        # encoder_flatten: Linear -> Linear -> LeakyReLU
        ef_s = _leaky(jnp.dot(hs[:, :hid], efw2,
                              preferred_element_type=jnp.float32) + efb2_ref[...])
        ef_q = _leaky(jnp.dot(hq[:, :hid], efw2,
                              preferred_element_type=jnp.float32) + efb2_ref[...])
        # encoder_score: Linear -> Linear -> LeakyReLU
        es_s = _leaky(jnp.dot(hs[:, hid:], esw2,
                              preferred_element_type=jnp.float32) + esb2_ref[...])
        es_q = _leaky(jnp.dot(hq[:, hid:], esw2,
                              preferred_element_type=jnp.float32) + esb2_ref[...])

        # pairwise squared mean-difference distances
        df = jnp.mean(ef_s[None, :, :] - ef_q[:, None, :], axis=2)    # [B, n]
        ds = jnp.mean(es_s[None, :, :] - es_q[:, None, :], axis=2)    # [B, n]
        fg_f = df * df
        fg_s = ds * ds

        # shared background score
        bg = (jnp.dot(xf_ref[...], bgw_ref[...],
                      preferred_element_type=jnp.float32) + bgb_ref[...])       # [B, 1]

        # softmax(exp(distance_weight)) mix; weights sum to 1 so the bg column is unchanged
        fg = (fg_f * dw0_ref[...] + fgc_ref[...] * dw1_ref[...]
              + fg_s * dw2_ref[...])                                             # [B, n]

        # decoder Linear(n+1, n+1) on [fg | bg], split to avoid an in-kernel concat
        y = (jnp.dot(fg, dwf_ref[...], preferred_element_type=jnp.float32)
             + bg * dwb_ref[...] + db_ref[...])                                  # [B, n+1]
        y = jax.nn.sigmoid(_leaky(y))
        o_ref[...] = (-(2.0 * (y - 0.5))) * scl_ref[...]


# --------------------------------------------------------------------------- #
# Parameters (deterministic synthetic init; mirrors the module's __init__ shapes)
# --------------------------------------------------------------------------- #
def init_params(key, way, representation_size, roi_size):
    feat_dim = 256 * roi_size * roi_size
    hid = 1024
    keys = iter(jax.random.split(key, 16))

    def lin(k, fan_in, fan_out, dtype=jnp.float32):
        kw, kb = jax.random.split(k)
        w = jax.random.normal(kw, (fan_in, fan_out), jnp.float32) / np.sqrt(fan_in)
        b = 0.01 * jax.random.normal(kb, (fan_out,), jnp.float32)
        return w.astype(dtype), b

    p = {}
    p["bbox_w"], p["bbox_b"] = lin(next(keys), representation_size, (way + 1) * 4)
    p["bg_w"], p["bg_b"] = lin(next(keys), representation_size, 1)
    # fused first layers: encoder_flatten (cols :hid) | encoder_score (cols hid:), bf16 stream
    ef_w1, ef_b1 = lin(next(keys), feat_dim, hid)
    es_w1, es_b1 = lin(next(keys), feat_dim, hid)
    p["w1_fused"] = jnp.concatenate([ef_w1, es_w1], axis=1).astype(jnp.bfloat16)
    p["b1_fused"] = jnp.concatenate([ef_b1, es_b1], axis=0)
    p["ef_w2"], p["ef_b2"] = lin(next(keys), hid, 64, jnp.bfloat16)
    p["es_w2"], p["es_b2"] = lin(next(keys), hid, way, jnp.bfloat16)
    p["dec_w"], p["dec_b"] = lin(next(keys), way + 1, way + 1)
    # 1x1 conv 256 -> 64 (stored [in, out]) + BatchNorm2d(64) in eval mode
    p["conv_w"], p["conv_b"] = lin(next(keys), 256, 64)
    p["bn_gamma"] = 1.0 + 0.1 * jax.random.normal(next(keys), (64,), jnp.float32)
    p["bn_beta"] = 0.1 * jax.random.normal(next(keys), (64,), jnp.float32)
    p["bn_mean"] = jnp.zeros((64,), jnp.float32)
    p["bn_var"] = jnp.ones((64,), jnp.float32)
    p["scale"] = jnp.zeros((1,), jnp.float32)          # nn.Parameter([0.0])
    p["distance_weight"] = jnp.zeros((3,), jnp.float32)
    return p


def _fold_bn(p, eps=1e-5):
    # eval-mode BatchNorm folded into the 1x1 conv
    s = p["bn_gamma"] / jnp.sqrt(p["bn_var"] + eps)              # [64]
    eff_w = p["conv_w"] * s[None, :]                             # [256, 64]
    eff_b = (p["conv_b"] - p["bn_mean"]) * s + p["bn_beta"]      # [64]
    return eff_w, eff_b


# --------------------------------------------------------------------------- #
# Forward pass (AirTransPredictHead.forward), eval mode
# --------------------------------------------------------------------------- #
def air_trans_predict_head_forward(params, support, query, x):
    """support: [n, 256, s, s]  query: [B, 256, s, s]  x: [B, rep, 1, 1] or [B, rep]."""
    if x.ndim == 4:
        assert x.shape[2:] == (1, 1)
    xf = x.reshape(x.shape[0], -1)                     # x.flatten(start_dim=1)
    B = xf.shape[0]
    rep = xf.shape[1]
    n, C, s, _ = support.shape
    HW = s * s
    K = C * HW
    hid = params["ef_w2"].shape[0]
    way = params["es_w2"].shape[1]
    assert n + 1 == params["dec_w"].shape[0]           # decoder is Linear(way+1, way+1)

    # ---------- kernel 1: bbox head + conv-encoder distance ----------
    eff_w, eff_b = _fold_bn(params)
    sup_pix = support.transpose(0, 2, 3, 1).reshape(n * HW, C)     # pixel-major for 1x1 conv
    qry_pix = query.transpose(0, 2, 3, 1).reshape(B * HW, C)
    P_s = jnp.repeat(jnp.eye(n, dtype=jnp.float32), HW, axis=1) / HW   # [n, n*HW]
    P_q = jnp.repeat(jnp.eye(B, dtype=jnp.float32), HW, axis=1) / HW   # [B, B*HW]

    bbox_deltas, fg_c = pl.pallas_call(
        _conv_head_kernel,
        out_shape=(jax.ShapeDtypeStruct((B, params["bbox_w"].shape[1]), jnp.float32),
                   jax.ShapeDtypeStruct((B, n), jnp.float32)),
    )(xf, params["bbox_w"], params["bbox_b"].reshape(1, -1),
      sup_pix, qry_pix, eff_w, eff_b.reshape(1, -1), P_s, P_q)

    # ---------- kernel 2: fused encoders + bg + distances + metric ----------
    sup_flat = support.reshape(n, -1)                  # channel-first flatten (torch.nn.Flatten)
    qry_flat = query.reshape(B, -1)

    if K % 1024 == 0:
        tk = 1024
    elif K % 512 == 0:
        tk = 512
    else:
        tk = K

    mw = jax.nn.softmax(jnp.exp(params["distance_weight"]))        # [3], sums to 1
    scale_exp = jnp.exp(params["scale"]).reshape(1, 1)
    dec_w = params["dec_w"]

    scores = pl.pallas_call(
        functools.partial(_encoder_metric_kernel, hid=hid),
        out_shape=jax.ShapeDtypeStruct((B, n + 1), jnp.float32),
        grid_spec=pltpu.PrefetchScalarGridSpec(
            num_scalar_prefetch=0,
            grid=(K // tk,),
            in_specs=[
                pl.BlockSpec((n, tk), lambda k: (0, k)),            # sup_flat
                pl.BlockSpec((B, tk), lambda k: (0, k)),            # qry_flat
                pl.BlockSpec((tk, 2 * hid), lambda k: (k, 0)),      # w1_fused (bf16)
                pl.BlockSpec((1, 2 * hid), lambda k: (0, 0)),       # b1_fused
                pl.BlockSpec((hid, 64), lambda k: (0, 0)),          # ef_w2 (bf16)
                pl.BlockSpec((1, 64), lambda k: (0, 0)),            # ef_b2
                pl.BlockSpec((hid, way), lambda k: (0, 0)),         # es_w2 (bf16)
                pl.BlockSpec((1, way), lambda k: (0, 0)),           # es_b2
                pl.BlockSpec((B, rep), lambda k: (0, 0)),           # xf
                pl.BlockSpec((rep, 1), lambda k: (0, 0)),           # bg_w
                pl.BlockSpec((1, 1), lambda k: (0, 0)),             # bg_b
                pl.BlockSpec((B, n), lambda k: (0, 0)),             # fg_c (from kernel 1)
                pl.BlockSpec((1, 1), lambda k: (0, 0)),             # multi_weight[0]
                pl.BlockSpec((1, 1), lambda k: (0, 0)),             # multi_weight[1]
                pl.BlockSpec((1, 1), lambda k: (0, 0)),             # multi_weight[2]
                pl.BlockSpec((1, 1), lambda k: (0, 0)),             # exp(scale)
                pl.BlockSpec((n, n + 1), lambda k: (0, 0)),         # dec_w[:n]
                pl.BlockSpec((1, n + 1), lambda k: (0, 0)),         # dec_w[n:]
                pl.BlockSpec((1, n + 1), lambda k: (0, 0)),         # dec_b
            ],
            out_specs=pl.BlockSpec((B, n + 1), lambda k: (0, 0)),
            scratch_shapes=[pltpu.VMEM((n, 2 * hid), jnp.float32),
                            pltpu.VMEM((B, 2 * hid), jnp.float32)],
        ),
        compiler_params=pltpu.CompilerParams(
            dimension_semantics=("arbitrary",)),
    )(sup_flat, qry_flat, params["w1_fused"], params["b1_fused"].reshape(1, -1),
      params["ef_w2"], params["ef_b2"].reshape(1, -1),
      params["es_w2"], params["es_b2"].reshape(1, -1),
      xf, params["bg_w"], params["bg_b"].reshape(1, 1),
      fg_c, mw[0].reshape(1, 1), mw[1].reshape(1, 1), mw[2].reshape(1, 1),
      scale_exp, dec_w[:n, :], dec_w[n:, :], params["dec_b"].reshape(1, -1))

    # TODO(synk): training-mode auxrank loss not implemented; module treated as eval
    # (self.training == False), where auxrank() returns 0 -> loss_aux = 0.
    loss_aux = jnp.zeros((), jnp.float32)
    return scores, bbox_deltas, loss_aux


# --------------------------------------------------------------------------- #
# Pure-JAX reference (same math, no Pallas) for a sanity check
# --------------------------------------------------------------------------- #
def reference_forward(params, support, query, x):
    xf = x.reshape(x.shape[0], -1)
    B, n, C = xf.shape[0], support.shape[0], support.shape[1]
    hid = params["ef_w2"].shape[0]
    lin = lambda v, w, b: v @ w.astype(jnp.float32) + b

    bbox = lin(xf, params["bbox_w"], params["bbox_b"])
    bg = lin(xf, params["bg_w"], params["bg_b"])

    w1f = params["w1_fused"].astype(jnp.float32)
    b1f = params["b1_fused"]
    sup_flat, qry_flat = support.reshape(n, -1), query.reshape(B, -1)

    def enc(v, w1, b1, w2, b2):
        return _leaky(lin(v @ w1 + b1, w2, b2))

    sf = enc(sup_flat, w1f[:, :hid], b1f[:hid], params["ef_w2"], params["ef_b2"])
    qf = enc(qry_flat, w1f[:, :hid], b1f[:hid], params["ef_w2"], params["ef_b2"])
    dist_f = jnp.concatenate([jnp.mean(sf[None] - qf[:, None], axis=2) ** 2, bg], axis=1)

    eff_w, eff_b = _fold_bn(params)
    conv_enc = lambda v: _leaky(v.transpose(0, 2, 3, 1).reshape(-1, C) @ eff_w
                                + eff_b).reshape(v.shape[0], -1)
    sc, qc = conv_enc(support), conv_enc(query)
    dist_c = jnp.concatenate([jnp.mean(sc[None] - qc[:, None], axis=2) ** 2, bg], axis=1)

    ss = enc(sup_flat, w1f[:, hid:], b1f[hid:], params["es_w2"], params["es_b2"])
    qs = enc(qry_flat, w1f[:, hid:], b1f[hid:], params["es_w2"], params["es_b2"])
    dist_s = jnp.concatenate([jnp.mean(ss[None] - qs[:, None], axis=2) ** 2, bg], axis=1)

    dist = jnp.stack([dist_f, dist_c, dist_s], axis=0)
    w = jax.nn.softmax(jnp.exp(params["distance_weight"]))[:, None, None]
    dist = (dist * w).sum(0)
    d = jax.nn.sigmoid(_leaky(lin(dist, params["dec_w"], params["dec_b"])))
    scores = (-(2.0 * (d - 0.5))) * jnp.exp(params["scale"])
    return scores, bbox, jnp.zeros((), jnp.float32)


if __name__ == "__main__":
    way, shot, rep, roi = 5, 1, 32, 4          # decoder is Linear(6,6) -> n_support = way = 5
    n_support, box_num = way, 8

    key = jax.random.PRNGKey(0)
    kp, ks, kq, kx = jax.random.split(key, 4)
    params = init_params(kp, way, rep, roi)
    support = jax.random.normal(ks, (n_support, 256, roi, roi), jnp.float32)
    query = jax.random.normal(kq, (box_num, 256, roi, roi), jnp.float32)
    x = jax.random.normal(kx, (box_num, rep, 1, 1), jnp.float32)

    scores, bbox_deltas, loss_aux = air_trans_predict_head_forward(
        params, support, query, x)
    jax.block_until_ready((scores, bbox_deltas, loss_aux))

    assert scores.shape == (box_num, way + 1)
    assert bbox_deltas.shape == (box_num, (way + 1) * 4)
    assert bool(jnp.all(jnp.isfinite(scores)))
    assert bool(jnp.all(jnp.isfinite(bbox_deltas)))

    sr, br, _ = reference_forward(params, support, query, x)
    np.testing.assert_allclose(np.asarray(scores), np.asarray(sr), rtol=5e-2, atol=5e-2)
    np.testing.assert_allclose(np.asarray(bbox_deltas), np.asarray(br), rtol=5e-2, atol=5e-2)

    print("KERNEL_OK")
</pallas_src>

<mosaic_0001>
module attributes {stable_mosaic.version = 11 : i64} {
  func.func @_conv_head_kernel(%arg0: memref<8x32xf32, #tpu.memory_space<vmem>>, %arg1: memref<32x24xf32, #tpu.memory_space<vmem>>, %arg2: memref<1x24xf32, #tpu.memory_space<vmem>>, %arg3: memref<80x256xf32, #tpu.memory_space<vmem>>, %arg4: memref<128x256xf32, #tpu.memory_space<vmem>>, %arg5: memref<256x64xf32, #tpu.memory_space<vmem>>, %arg6: memref<1x64xf32, #tpu.memory_space<vmem>>, %arg7: memref<5x80xf32, #tpu.memory_space<vmem>>, %arg8: memref<8x128xf32, #tpu.memory_space<vmem>>, %arg9: memref<8x24xf32, #tpu.memory_space<vmem>>, %arg10: memref<8x5xf32, #tpu.memory_space<vmem>>) attributes {dimension_semantics = [], scalar_prefetch = 0 : i64, scratch_operands = 0 : i64, tpu.core_type = #tpu.core_type<tc>} {
    %c0 = arith.constant 0 : index
    %c0_0 = arith.constant 0 : index
    %0 = vector.load %arg0[%c0, %c0_0] : memref<8x32xf32, #tpu.memory_space<vmem>>, vector<8x32xf32>
    %c0_1 = arith.constant 0 : index
    %c0_2 = arith.constant 0 : index
    %1 = vector.load %arg1[%c0_1, %c0_2] : memref<32x24xf32, #tpu.memory_space<vmem>>, vector<32x24xf32>
    %cst = arith.constant dense<0.000000e+00> : vector<8x24xf32>
    %2 = tpu.matmul %0, %1, %cst {dimension_numbers = #tpu.dot_dimension_numbers<[1], [0], [0], [1], [0, 0, 1, 1], [], []>} : vector<8x32xf32>, vector<32x24xf32>, vector<8x24xf32> -> vector<8x24xf32>
    %c0_3 = arith.constant 0 : index
    %c0_4 = arith.constant 0 : index
    %3 = vector.load %arg2[%c0_3, %c0_4] : memref<1x24xf32, #tpu.memory_space<vmem>>, vector<1x24xf32>
    %4 = vector.broadcast %3 : vector<1x24xf32> to vector<8x24xf32>
    %5 = arith.addf %2, %4 : vector<8x24xf32>
    %c0_5 = arith.constant 0 : index
    %c0_6 = arith.constant 0 : index
    %6 = vector.load %arg9[%c0_5, %c0_6] : memref<8x24xf32, #tpu.memory_space<vmem>>, vector<8x24xf32>
    tpu.vector_store %arg9[%c0_5, %c0_6], %5 {strides = array<i32>} : memref<8x24xf32, #tpu.memory_space<vmem>>, vector<8x24xf32>,
    %c0_7 = arith.constant 0 : index
    %c0_8 = arith.constant 0 : index
    %7 = vector.load %arg3[%c0_7, %c0_8] : memref<80x256xf32, #tpu.memory_space<vmem>>, vector<80x256xf32>
    %c0_9 = arith.constant 0 : index
    %c0_10 = arith.constant 0 : index
    %8 = vector.load %arg5[%c0_9, %c0_10] : memref<256x64xf32, #tpu.memory_space<vmem>>, vector<256x64xf32>
    %cst_11 = arith.constant dense<0.000000e+00> : vector<80x64xf32>
    %9 = tpu.matmul %7, %8, %cst_11 {dimension_numbers = #tpu.dot_dimension_numbers<[1], [0], [0], [1], [0, 0, 1, 1], [], []>} : vector<80x256xf32>, vector<256x64xf32>, vector<80x64xf32> -> vector<80x64xf32>
    %c0_12 = arith.constant 0 : index
    %c0_13 = arith.constant 0 : index
    %10 = vector.load %arg6[%c0_12, %c0_13] : memref<1x64xf32, #tpu.memory_space<vmem>>, vector<1x64xf32>
    %11 = vector.broadcast %10 : vector<1x64xf32> to vector<80x64xf32>
    %12 = arith.addf %9, %11 : vector<80x64xf32>
    %cst_14 = arith.constant 0.000000e+00 : f32
    %13 = vector.broadcast %cst_14 : f32 to vector<80x64xf32>
    %14 = arith.cmpf oge, %12, %13 : vector<80x64xf32>
    %cst_15 = arith.constant 0.00999999977 : f32
    %15 = vector.broadcast %cst_15 : f32 to vector<80x64xf32>
    %16 = arith.mulf %15, %12 : vector<80x64xf32>
    %17 = arith.select %14, %12, %16 : vector<80x64xi1>, vector<80x64xf32>
    %c0_16 = arith.constant 0 : index
    %c0_17 = arith.constant 0 : index
    %18 = vector.load %arg4[%c0_16, %c0_17] : memref<128x256xf32, #tpu.memory_space<vmem>>, vector<128x256xf32>
    %c0_18 = arith.constant 0 : index
    %c0_19 = arith.constant 0 : index
    %19 = vector.load %arg5[%c0_18, %c0_19] : memref<256x64xf32, #tpu.memory_space<vmem>>, vector<256x64xf32>
    %cst_20 = arith.constant dense<0.000000e+00> : vector<128x64xf32>
    %20 = tpu.matmul %18, %19, %cst_20 {dimension_numbers = #tpu.dot_dimension_numbers<[1], [0], [0], [1], [0, 0, 1, 1], [], []>} : vector<128x256xf32>, vector<256x64xf32>, vector<128x64xf32> -> vector<128x64xf32>
    %c0_21 = arith.constant 0 : index
    %c0_22 = arith.constant 0 : index
    %21 = vector.load %arg6[%c0_21, %c0_22] : memref<1x64xf32, #tpu.memory_space<vmem>>, vector<1x64xf32>
    %22 = vector.broadcast %21 : vector<1x64xf32> to vector<128x64xf32>
    %23 = arith.addf %20, %22 : vector<128x64xf32>
    %cst_23 = arith.constant 0.000000e+00 : f32
    %24 = vector.broadcast %cst_23 : f32 to vector<128x64xf32>
    %25 = arith.cmpf oge, %23, %24 : vector<128x64xf32>
    %cst_24 = arith.constant 0.00999999977 : f32
    %26 = vector.broadcast %cst_24 : f32 to vector<128x64xf32>
    %27 = arith.mulf %26, %23 : vector<128x64xf32>
    %28 = arith.select %25, %23, %27 : vector<128x64xi1>, vector<128x64xf32>
    %c0_25 = arith.constant 0 : index
    %c0_26 = arith.constant 0 : index
    %29 = vector.load %arg7[%c0_25, %c0_26] : memref<5x80xf32, #tpu.memory_space<vmem>>, vector<5x80xf32>
    %cst_27 = arith.constant dense<0.000000e+00> : vector<5x64xf32>
    %30 = tpu.matmul %29, %17, %cst_27 {dimension_numbers = #tpu.dot_dimension_numbers<[1], [0], [0], [1], [0, 0, 1, 1], [], []>} : vector<5x80xf32>, vector<80x64xf32>, vector<5x64xf32> -> vector<5x64xf32>
    %c0_28 = arith.constant 0 : index
    %c0_29 = arith.constant 0 : index
    %31 = vector.load %arg8[%c0_28, %c0_29] : memref<8x128xf32, #tpu.memory_space<vmem>>, vector<8x128xf32>
    %cst_30 = arith.constant dense<0.000000e+00> : vector<8x64xf32>
    %32 = tpu.matmul %31, %28, %cst_30 {dimension_numbers = #tpu.dot_dimension_numbers<[1], [0], [0], [1], [0, 0, 1, 1], [], []>} : vector<8x128xf32>, vector<128x64xf32>, vector<8x64xf32> -> vector<8x64xf32>
    %33 = vector.shape_cast %30 : vector<5x64xf32> to vector<1x5x64xf32>
    %34 = vector.shape_cast %32 : vector<8x64xf32> to vector<8x1x64xf32>
    %35 = vector.broadcast %33 : vector<1x5x64xf32> to vector<8x5x64xf32>
    %36 = vector.broadcast %34 : vector<8x1x64xf32> to vector<8x5x64xf32>
    %37 = arith.subf %35, %36 : vector<8x5x64xf32>
    %cst_31 = arith.constant dense<0.000000e+00> : vector<8x5xf32>
    %38 = vector.multi_reduction <add>, %37, %cst_31 [2] : vector<8x5x64xf32> to vector<8x5xf32>
    %cst_32 = arith.constant 6.400000e+01 : f32
    %39 = vector.broadcast %cst_32 : f32 to vector<8x5xf32>
    %40 = arith.divf %38, %39 : vector<8x5xf32>
    %41 = arith.mulf %40, %40 : vector<8x5xf32>
    %c0_33 = arith.constant 0 : index
    %c0_34 = arith.constant 0 : index
    %42 = vector.load %arg10[%c0_33, %c0_34] : memref<8x5xf32, #tpu.memory_space<vmem>>, vector<8x5xf32>
    tpu.vector_store %arg10[%c0_33, %c0_34], %41 {strides = array<i32>} : memref<8x5xf32, #tpu.memory_space<vmem>>, vector<8x5xf32>,
    return
  }
}

</mosaic_0001>

<bundles_post_ra>
// kernel: tpu_custom_call.1
= control target key start
LH: loop header
LB: loop body
LE: loop exit
PB: predicated region body
PF: predicated region fallthrough
CT: control target
= control target key end

     0   :  { %16 = vsyncpa [#allocation3], 0  ;;  %v1223_v3 = vmov 0.0   ;;  %vm48_vm0 = vcmask 261120   ;;  %vm1224_vm1 = vmmov 0   ;;  %s1722_s0 = inlined_call_operand.vmem [shape: f32[8,32], index: 0, kind: input, shape index: {}]   ;;  %s1723_s1 = inlined_call_operand.vmem [shape: f32[32,24], index: 1, kind: input, shape index: {}]   ;;  %s1724_s2 = inlined_call_operand.vmem [shape: f32[1,24], index: 2, kind: input, shape index: {}]   ;;  %s1725_s3 = inlined_call_operand.vmem [shape: f32[80,256], index: 3, kind: input, shape index: {}]   ;;  %s1726_s4 = inlined_call_operand.vmem [shape: f32[128,256], index: 4, kind: input, shape index: {}]   ;;  %s1727_s5 = inlined_call_operand.vmem [shape: f32[256,64], index: 5, kind: input, shape index: {}]   ;;  %s1728_s6 = inlined_call_operand.vmem [shape: f32[1,64], index: 6, kind: input, shape index: {}]   ;;  %s1729_s7 = inlined_call_operand.vmem [shape: f32[5,80], index: 7, kind: input, shape index: {}]   ;;  %s1730_s8 = inlined_call_operand.vmem [shape: f32[8,128], index: 8, kind: input, shape index: {}]   ;;  %s1731_s9 = inlined_call_operand.hbm [shape: f32[8,24], index: 9, kind: output, shape index: {0}]   ;;  %s1732_s10 = inlined_call_operand.hbm [shape: f32[8,5], index: 10, kind: output, shape index: {1}]  }
   0x1   :  { %v175_v0 = vld [vmem:[%s1727_s5 + $0xf8] sm:$0xff]  ;;  %1105 = vmatprep.subr.mxu1 %v1223_v3  ;;  %v174_v4 = vld [vmem:[%s1727_s5 + $0xf0] sm:$0xff]  ;;  %v173_v7 = vld [vmem:[%s1727_s5 + $0xe8] sm:$0xff]  ;;  %1113 = vmatprep.mubr.msk.f32.mxu1 %vm1224_vm1, %v1223_v3 }
   0x2   :  { %v40_v1 = vld [vmem:[%s1723_s1 + $0x18] sm:$0xff]  ;;  %997 = vmatprep.subr.mxu0 %v175_v0  ;;  %v39_v5 = vld [vmem:[%s1723_s1 + $0x10] sm:$0xff]  ;;  %v38_v8 = vld [vmem:[%s1723_s1 + $0x8] sm:$0xff] }
   0x3   :  { %v159_v2 = vld [vmem:[%s1727_s5 + $0x78] sm:$0xff]  ;;  %v158_v6 = vld [vmem:[%s1727_s5 + $0x70] sm:$0xff]  ;;  %1106 = vmatpush3.msra.mxu1 %v40_v1  ;;  %v157_v9 = vld [vmem:[%s1727_s5 + $0x68] sm:$0xff] }
   0x4   :  { %998 = vmatpush3.msra.mxu0 %v159_v2  ;;  %1107 = vmatprep.subr.mxu1 %v1223_v3  ;;  %v172_v10 = vld [vmem:[%s1727_s5 + $0xe0] sm:$0xff]  ;;  %v171_v13 = vld [vmem:[%s1727_s5 + $0xd8] sm:$0xff]  ;;  %v170_v16 = vld [vmem:[%s1727_s5 + $0xd0] sm:$0xff] }
   0x5   :  { %999 = vmatprep.subr.mxu0 %v174_v4  ;;  %1108 = vmatpush3.msra.mxu1 %v39_v5  ;;  %v37_v11 = vld [vmem:[%s1723_s1] sm:$0xff]  ;;  %v155_v15 = vld [vmem:[%s1727_s5 + $0x58] sm:$0xff]  ;;  %v154_v17 = vld [vmem:[%s1727_s5 + $0x50] sm:$0xff] }
   0x6   :  { %1000 = vmatpush3.msra.mxu0 %v158_v6  ;;  %1109 = vmatprep.subr.mxu1 %v1223_v3  ;;  %v156_v12 = vld [vmem:[%s1727_s5 + $0x60] sm:$0xff]  ;;  %v169_v18 = vld [vmem:[%s1727_s5 + $0xc8] sm:$0xff]  ;;  %v167_v22 = vld [vmem:[%s1727_s5 + $0xb8] sm:$0xff] }
   0x7   :  { %1001 = vmatprep.subr.mxu0 %v173_v7  ;;  %1110 = vmatpush3.msra.mxu1 %v38_v8  ;;  %v36_v14 = vld [vmem:[%s1722_s0] sm:$0xff]  ;;  %v153_v19 = vld [vmem:[%s1727_s5 + $0x48] sm:$0xff]  ;;  %v151_v23 = vld [vmem:[%s1727_s5 + $0x38] sm:$0xff] }
   0x8   :  { %1002 = vmatpush3.msra.mxu0 %v157_v9  ;;  %1111 = vmatprep.subr.mxu1 %v1223_v3  ;;  %v168_v20 = vld [vmem:[%s1727_s5 + $0xc0] sm:$0xff]  ;;  %v166_v24 = vld [vmem:[%s1727_s5 + $0xb0] sm:$0xff]  ;;  %v165_v26 = vld [vmem:[%s1727_s5 + $0xa8] sm:$0xff] }
   0x9   :  { %1003 = vmatprep.subr.mxu0 %v172_v10  ;;  %1112 = vmatpush3.msra.mxu1 %v37_v11  ;;  %v152_v21 = vld [vmem:[%s1727_s5 + $0x40] sm:$0xff]  ;;  %v150_v25 = vld [vmem:[%s1727_s5 + $0x30] sm:$0xff]  ;;  %v149_v27 = vld [vmem:[%s1727_s5 + $0x28] sm:$0xff] }
   0xa   :  { %1004 = vmatpush3.msra.mxu0 %v156_v12  ;;  %935 = vmatprep.subr.mxu1 %v175_v0  ;;  %v164_v28 = vld [vmem:[%s1727_s5 + $0xa0] sm:$0xff]  ;;  %v163_v30 = vld [vmem:[%s1727_s5 + $0x98] sm:$0xff]  ;;  %v162_v32 = vld [vmem:[%s1727_s5 + $0x90] sm:$0xff] }
   0xb   :  { %1005 = vmatprep.subr.mxu0 %v171_v13  ;;  %1114 = vmatmul.mubr.msk.f32.vlgmr.msra.gmra.mxu1 %vm48_vm0, %v36_v14  ;;  %v148_v29 = vld [vmem:[%s1727_s5 + $0x20] sm:$0xff]  ;;  %v147_v31 = vld [vmem:[%s1727_s5 + $0x18] sm:$0xff]  ;;  %v146_v33 = vld [vmem:[%s1727_s5 + $0x10] sm:$0xff] }
   0xc   :  { %936 = vmatpush3.msra.mxu1 %v159_v2  ;;  %1006 = vmatpush3.msra.mxu0 %v155_v15  ;;  %v161_v34 = vld [vmem:[%s1727_s5 + $0x88] sm:$0xff]  ;;  %v160_v36 = vld [vmem:[%s1727_s5 + $0x80] sm:$0xff] }
   0xd   :  { %937 = vmatprep.subr.mxu1 %v174_v4  ;;  %1007 = vmatprep.subr.mxu0 %v170_v16  ;;  %v145_v35 = vld [vmem:[%s1727_s5 + $0x8] sm:$0xff] }
   0xe   :  { %938 = vmatpush3.msra.mxu1 %v158_v6  ;;  %1008 = vmatpush3.msra.mxu0 %v154_v17 }
   0xf   :  { %939 = vmatprep.subr.mxu1 %v173_v7  ;;  %1009 = vmatprep.subr.mxu0 %v169_v18 }
  0x10   :  { %940 = vmatpush3.msra.mxu1 %v157_v9  ;;  %1010 = vmatpush3.msra.mxu0 %v153_v19 }
  0x11   :  { %941 = vmatprep.subr.mxu1 %v172_v10  ;;  %1011 = vmatprep.subr.mxu0 %v168_v20 }
  0x12   :  { %942 = vmatpush3.msra.mxu1 %v156_v12  ;;  %1012 = vmatpush3.msra.mxu0 %v152_v21 }
  0x13   :  { %943 = vmatprep.subr.mxu1 %v171_v13  ;;  %1013 = vmatprep.subr.mxu0 %v167_v22 }
  0x14   :  { %944 = vmatpush3.msra.mxu1 %v155_v15  ;;  %1014 = vmatpush3.msra.mxu0 %v151_v23 }
  0x15   :  { %945 = vmatprep.subr.mxu1 %v170_v16  ;;  %1015 = vmatprep.subr.mxu0 %v166_v24 }
  0x16   :  { %946 = vmatpush3.msra.mxu1 %v154_v17  ;;  %1016 = vmatpush3.msra.mxu0 %v150_v25 }
  0x17   :  { %947 = vmatprep.subr.mxu1 %v169_v18  ;;  %1017 = vmatprep.subr.mxu0 %v165_v26 }
  0x18   :  { %948 = vmatpush3.msra.mxu1 %v153_v19  ;;  %1018 = vmatpush3.msra.mxu0 %v149_v27 }
  0x19   :  { %949 = vmatprep.subr.mxu1 %v168_v20  ;;  %1019 = vmatprep.subr.mxu0 %v164_v28 }
  0x1a   :  { %950 = vmatpush3.msra.mxu1 %v152_v21  ;;  %1020 = vmatpush3.msra.mxu0 %v148_v29 }
  0x1b   :  { %951 = vmatprep.subr.mxu1 %v167_v22  ;;  %1021 = vmatprep.subr.mxu0 %v163_v30 }
  0x1c   :  { %952 = vmatpush3.msra.mxu1 %v151_v23  ;;  %1022 = vmatpush3.msra.mxu0 %v147_v31 }
  0x1d   :  { %953 = vmatprep.subr.mxu1 %v166_v24  ;;  %1023 = vmatprep.subr.mxu0 %v162_v32 }
  0x1e   :  { %954 = vmatpush3.msra.mxu1 %v150_v25  ;;  %1024 = vmatpush3.msra.mxu0 %v146_v33 }
  0x1f   :  { %17 = vsyncpa [#allocation5], 0  ;;  %955 = vmatprep.subr.mxu1 %v165_v26  ;;  %1025 = vmatprep.subr.mxu0 %v161_v34  ;;  %v144_v37 = vld [vmem:[%s1727_s5] sm:$0xff]  ;;  %v329_v38 = vld [vmem:[%s1726_s4 + $0x8] sm:$0xff]  ;;  %vm122_vm2 = vcmask 195584   ;;  %vm554_vm15 = vcmask 654336  }
  0x20   :  { %956 = vmatpush3.msra.mxu1 %v149_v27  ;;  %1026 = vmatpush3.msra.mxu0 %v145_v35  ;;  %v328_v39 = vld [vmem:[%s1726_s4] sm:$0xff]  ;;  %v331_v40 = vld [vmem:[%s1726_s4 + $0x18] sm:$0xff]  ;;  %v125_v41 = vld [vmem:[%s1725_s3 + $0x8] sm:$0xff] }
  0x21   :  { %957 = vmatprep.subr.mxu1 %v164_v28  ;;  %1027 = vmatprep.subr.mxu0 %v160_v36  ;;  %v330_v42 = vld [vmem:[%s1726_s4 + $0x10] sm:$0xff]  ;;  %v333_v43 = vld [vmem:[%s1726_s4 + $0x28] sm:$0xff]  ;;  %v124_v44 = vld [vmem:[%s1725_s3] sm:$0xff] }
  0x22   :  { %958 = vmatpush3.msra.mxu1 %v148_v29  ;;  %1028 = vmatpush3.msra.mxu0 %v144_v37  ;;  %v332_v45 = vld [vmem:[%s1726_s4 + $0x20] sm:$0xff]  ;;  %v127_v46 = vld [vmem:[%s1725_s3 + $0x18] sm:$0xff]  ;;  %v126_v48 = vld [vmem:[%s1725_s3 + $0x10] sm:$0xff] }
  0x23   :  { %424 = vmatprep.mubr.f32.mxu0 %v329_v38  ;;  %959 = vmatprep.subr.mxu1 %v163_v30  ;;  %v335_v47 = vld [vmem:[%s1726_s4 + $0x38] sm:$0xff]  ;;  %v334_v49 = vld [vmem:[%s1726_s4 + $0x30] sm:$0xff]  ;;  %v129_v50 = vld [vmem:[%s1725_s3 + $0x28] sm:$0xff] }
  0x24   :  { %425 = vmatmul.mubr.f32.vlgmr.msra.gmra.mxu0 %v328_v39  ;;  %960 = vmatpush3.msra.mxu1 %v147_v31  ;;  %v337_v51 = vld [vmem:[%s1726_s4 + $0x48] sm:$0xff]  ;;  %v128_v52 = vld [vmem:[%s1725_s3 + $0x20] sm:$0xff]  ;;  %v131_v54 = vld [vmem:[%s1725_s3 + $0x38] sm:$0xff] }
  0x25   :  { %961 = vmatprep.subr.mxu1 %v162_v32  ;;  %429 = vmatprep.mubr.f32.mxu0 %v331_v40  ;;  %v336_v53 = vld [vmem:[%s1726_s4 + $0x40] sm:$0xff]  ;;  %v339_v55 = vld [vmem:[%s1726_s4 + $0x58] sm:$0xff]  ;;  %v130_v56 = vld [vmem:[%s1725_s3 + $0x30] sm:$0xff] }
  0x26   :  { %962 = vmatpush3.msra.mxu1 %v146_v33  ;;  %247 = vmatprep.mubr.f32.mxu1 %v125_v41  ;;  %v338_v57 = vld [vmem:[%s1726_s4 + $0x50] sm:$0xff]  ;;  %v133_v58 = vld [vmem:[%s1725_s3 + $0x48] sm:$0xff]  ;;  %v132_v60 = vld [vmem:[%s1725_s3 + $0x40] sm:$0xff] }
  0x27   :  { %963 = vmatprep.subr.mxu1 %v161_v34  ;;  %1139 = vmatprep.subr.mxu0 %v1223_v3  ;;  %v341_v59 = vld [vmem:[%s1726_s4 + $0x68] sm:$0xff]  ;;  %v340_v61 = vld [vmem:[%s1726_s4 + $0x60] sm:$0xff]  ;;  %v135_v62 = vld [vmem:[%s1725_s3 + $0x58] sm:$0xff] }
  0x28   :  { %430 = vmatmul.mubr.f32.gmra.mxu0 %v330_v42  ;;  %964 = vmatpush3.msra.mxu1 %v145_v35  ;;  %v343_v63 = vld [vmem:[%s1726_s4 + $0x78] sm:$0xff]  ;;  %v134_v0 = vld [vmem:[%s1725_s3 + $0x50] sm:$0xff]  ;;  %v137_v2 = vld [vmem:[%s1725_s3 + $0x68] sm:$0xff] }
  0x29   :  { %965 = vmatprep.subr.mxu1 %v160_v36  ;;  %434 = vmatprep.mubr.f32.mxu0 %v333_v43  ;;  %v342_v1 = vld [vmem:[%s1726_s4 + $0x70] sm:$0xff]  ;;  %v345_v4 = vld [vmem:[%s1726_s4 + $0x88] sm:$0xff]  ;;  %v136_v5 = vld [vmem:[%s1725_s3 + $0x60] sm:$0xff] }
  0x2a   :  { %966 = vmatpush3.msra.mxu1 %v144_v37  ;;  %v344_v6 = vld [vmem:[%s1726_s4 + $0x80] sm:$0xff]  ;;  %v139_v7 = vld [vmem:[%s1725_s3 + $0x78] sm:$0xff]  ;;  %v138_v9 = vld [vmem:[%s1725_s3 + $0x70] sm:$0xff] }
  0x2b   :  { %248 = vmatmul.mubr.f32.vlgmr.msra.gmra.mxu1 %v124_v44  ;;  %1116 = vmatprep.subr.mxu1 %v1223_v3  ;;  %v347_v8 = vld [vmem:[%s1726_s4 + $0x98] sm:$0xff]  ;;  %v346_v10 = vld [vmem:[%s1726_s4 + $0x90] sm:$0xff]  ;;  %v141_v11 = vld [vmem:[%s1725_s3 + $0x88] sm:$0xff] }
  0x2c   :  { %435 = vmatmul.mubr.f32.gmra.mxu0 %v332_v45  ;;  %252 = vmatprep.mubr.f32.mxu1 %v127_v46  ;;  %v349_v12 = vld [vmem:[%s1726_s4 + $0xa8] sm:$0xff]  ;;  %v140_v13 = vld [vmem:[%s1725_s3 + $0x80] sm:$0xff]  ;;  %v143_v15 = vld [vmem:[%s1725_s3 + $0x98] sm:$0xff] }
  0x2d   :  { %439 = vmatprep.mubr.f32.mxu0 %v335_v47  ;;  %v348_v14 = vld [vmem:[%s1726_s4 + $0xa0] sm:$0xff]  ;;  %v351_v16 = vld [vmem:[%s1726_s4 + $0xb8] sm:$0xff]  ;;  %v142_v17 = vld [vmem:[%s1725_s3 + $0x90] sm:$0xff] }
  0x2e   :  { %v350_v18 = vld [vmem:[%s1726_s4 + $0xb0] sm:$0xff]  ;;  %v353_v19 = vld [vmem:[%s1726_s4 + $0xc8] sm:$0xff]  ;;  %v352_v20 = vld [vmem:[%s1726_s4 + $0xc0] sm:$0xff] }
  0x2f   :  { %253 = vmatmul.mubr.f32.gmra.mxu1 %v126_v48  ;;  %v355_v21 = vld [vmem:[%s1726_s4 + $0xd8] sm:$0xff]  ;;  %v354_v22 = vld [vmem:[%s1726_s4 + $0xd0] sm:$0xff]  ;;  %v357_v23 = vld [vmem:[%s1726_s4 + $0xe8] sm:$0xff] }
  0x30   :  { %440 = vmatmul.mubr.f32.gmra.mxu0 %v334_v49  ;;  %257 = vmatprep.mubr.f32.mxu1 %v129_v50  ;;  %v356_v24 = vld [vmem:[%s1726_s4 + $0xe0] sm:$0xff]  ;;  %v359_v25 = vld [vmem:[%s1726_s4 + $0xf8] sm:$0xff]  ;;  %v358_v26 = vld [vmem:[%s1726_s4 + $0xf0] sm:$0xff] }
  0x31   :  { %444 = vmatprep.mubr.f32.mxu0 %v337_v51  ;;  %v926_v27 = vld [vmem:[%s1724_s2] ss:$0 sm:$0xff] }
  0x33   :  { %258 = vmatmul.mubr.f32.gmra.mxu1 %v128_v52 }
  0x34   :  { %445 = vmatmul.mubr.f32.gmra.mxu0 %v336_v53  ;;  %262 = vmatprep.mubr.f32.mxu1 %v131_v54 }
  0x35   :  { %449 = vmatprep.mubr.f32.mxu0 %v339_v55 }
  0x37   :  { %263 = vmatmul.mubr.f32.gmra.mxu1 %v130_v56 }
  0x38   :  { %450 = vmatmul.mubr.f32.gmra.mxu0 %v338_v57  ;;  %267 = vmatprep.mubr.f32.mxu1 %v133_v58 }
  0x39   :  { %454 = vmatprep.mubr.f32.mxu0 %v341_v59 }
  0x3b   :  { %268 = vmatmul.mubr.f32.gmra.mxu1 %v132_v60 }
  0x3c   :  { %455 = vmatmul.mubr.f32.gmra.mxu0 %v340_v61  ;;  %272 = vmatprep.mubr.f32.mxu1 %v135_v62 }
  0x3d   :  { %459 = vmatprep.mubr.f32.mxu0 %v343_v63 }
  0x3f   :  { %273 = vmatmul.mubr.f32.gmra.mxu1 %v134_v0 }
  0x40   :  { %460 = vmatmul.mubr.f32.gmra.mxu0 %v342_v1  ;;  %277 = vmatprep.mubr.f32.mxu1 %v137_v2 }
  0x41   :  { %464 = vmatprep.mubr.f32.mxu0 %v345_v4 }
  0x43   :  { %278 = vmatmul.mubr.f32.gmra.mxu1 %v136_v5 }
  0x44   :  { %465 = vmatmul.mubr.f32.gmra.mxu0 %v344_v6  ;;  %282 = vmatprep.mubr.f32.mxu1 %v139_v7 }
  0x45   :  { %469 = vmatprep.mubr.f32.mxu0 %v347_v8 }
  0x47   :  { %283 = vmatmul.mubr.f32.gmra.mxu1 %v138_v9 }
  0x48   :  { %470 = vmatmul.mubr.f32.gmra.mxu0 %v346_v10  ;;  %287 = vmatprep.mubr.f32.mxu1 %v141_v11 }
  0x49   :  { %474 = vmatprep.mubr.f32.mxu0 %v349_v12 }
  0x4b   :  { %288 = vmatmul.mubr.f32.gmra.mxu1 %v140_v13 }
  0x4c   :  { %475 = vmatmul.mubr.f32.gmra.mxu0 %v348_v14  ;;  %292 = vmatprep.mubr.f32.mxu1 %v143_v15  ;;  %v1610_v15 = vld [vmem:[%s1728_s6] ss:$0 sm:$0xff] }
  0x4d   :  { %479 = vmatprep.mubr.f32.mxu0 %v351_v16 }
  0x4f   :  { %293 = vmatmul.mubr.f32.gmra.mxu1 %v142_v17 }
  0x50   :  { %480 = vmatmul.mubr.f32.gmra.mxu0 %v350_v18  ;;  %1136 = vmatprep.mubr.msk.f32.mxu1 %vm1224_vm1, %v1223_v3 }
  0x51   :  { %484 = vmatprep.mubr.f32.mxu0 %v353_v19 }
  0x54   :  { %485 = vmatmul.mubr.f32.gmra.mxu0 %v352_v20 }
  0x55   :  { %489 = vmatprep.mubr.f32.mxu0 %v355_v21 }
  0x58   :  { %490 = vmatmul.mubr.f32.gmra.mxu0 %v354_v22 }
  0x59   :  { %494 = vmatprep.mubr.f32.mxu0 %v357_v23 }
  0x5c   :  { %495 = vmatmul.mubr.f32.gmra.mxu0 %v356_v24 }
  0x5d   :  { %499 = vmatprep.mubr.f32.mxu0 %v359_v25 }
  0x60   :  { %500 = vmatmul.mubr.f32.gmra.mxu0 %v358_v26 }
  0x61   :  { %1171 = vmatprep.mubr.msk.f32.mxu0 %vm1224_vm1, %v1223_v3 }
  0xcb   :  { %v118_v28 = vpop.f32.mrf.mxu1 }
  0xcc   :  { %v119_v29 = vadd.f32 %v926_v27, %v118_v28 }
  0xcd   :  { %v1115_v30 = vpop.f32.mrf.mxu1 }
  0xce   :  { %123 = vst.msk [vmem:[#allocation2] sm:$0xff] %vm122_vm2, %v119_v29 }
  0xe4   :  { %v1029_v31 = vpop.f32.mrf.mxu0 }
  0xe6   :  { %v1030_v32 = vpop.f32.mrf.mxu0 }
  0xe7   :  { %v1565_v33 = vadd.f32 %v1030_v32, %v1029_v31 }
  0xe8   :  { %v1032_v34 = vpop.f32.mrf.mxu0 }
  0xea   :  { %v1033_v35 = vpop.f32.mrf.mxu0 }
  0xeb   :  { %v1567_v36 = vadd.f32 %v1033_v35, %v1032_v34  ;;  %v1569_v37 = vpop.f32.mrf.mxu1 }
  0xec   :  { %v1035_v38 = vpop.f32.mrf.mxu0 }
  0xed   :  { %v1571_v39 = vpop.f32.mrf.mxu1 }
  0xee   :  { %v1036_v40 = vpop.f32.mrf.mxu0 }
  0xef   :  { %v1573_v41 = vadd.f32 %v1036_v40, %v1035_v38  ;;  %v1575_v42 = vpop.f32.mrf.mxu1 }
  0xf0   :  { %v1038_v43 = vpop.f32.mrf.mxu0 }
  0xf1   :  { %v1577_v44 = vpop.f32.mrf.mxu1 }
  0xf2   :  { %v1039_v45 = vpop.f32.mrf.mxu0 }
  0xf3   :  { %v1579_v46 = vadd.f32 %v1039_v45, %v1038_v43  ;;  %v973_v47 = vpop.f32.mrf.mxu1 }
  0xf4   :  { %v1041_v48 = vpop.f32.mrf.mxu0 }
  0xf5   :  { %v974_v49 = vpop.f32.mrf.mxu1 }
  0xf6   :  { %v1042_v50 = vpop.f32.mrf.mxu0 }
  0xf7   :  { %v1581_v51 = vadd.f32 %v1042_v50, %v1041_v48  ;;  %v976_v52 = vpop.f32.mrf.mxu1  ;;  %v975_v50 = vadd.f32 %v974_v49, %v973_v47  ;;  %v969_v47 = vadd.f32 %v1571_v39, %v1569_v37 }
  0xf8   :  { %v1583_v53 = vpop.f32.mrf.mxu0 }
  0xf9   :  { %v977_v54 = vpop.f32.mrf.mxu1  ;;  %v260_v49 = vadd.f32 %v975_v50, %v1610_v15  ;;  %v250_v37 = vadd.f32 %v969_v47, %v1610_v15 }
  0xfa   :  { %v1585_v55 = vpop.f32.mrf.mxu0  ;;  %v978_v35 = vadd.f32 %v977_v54, %v976_v52  ;;  %v972_v52 = vadd.f32 %v1577_v44, %v1575_v42 }
  0xfb   :  { %v979_v56 = vpop.f32.mrf.mxu1  ;;  %v310_v39 = vmul.f32 0.01, %v260_v49  ;;  %vm300_vm10 = vcmp.ge.f32.partialorder %v260_v49, 0.0  ;;  %vm298_vm12 = vcmp.ge.f32.partialorder %v250_v37, 0.0 }
  0xfc   :  { %v1587_v57 = vpop.f32.mrf.mxu0  ;;  %v265_v54 = vadd.f32 %v978_v35, %v1610_v15  ;;  %v255_v42 = vadd.f32 %v972_v52, %v1610_v15  ;;  %v553_v35 = vld [vmem:[%s1729_s7] sm:$0x1f] }
  0xfd   :  { %v980_v58 = vpop.f32.mrf.mxu1 }
  0xfe   :  { %v1589_v59 = vpop.f32.mrf.mxu0  ;;  %v981_v25 = vadd.f32 %v980_v58, %v979_v56  ;;  %v311_v44 = vmul.f32 0.01, %v265_v54  ;;  %vm301_vm9 = vcmp.ge.f32.partialorder %v265_v54, 0.0  ;;  %vm299_vm11 = vcmp.ge.f32.partialorder %v255_v42, 0.0 }
  0xff   :  { %v982_v60 = vpop.f32.mrf.mxu1 }
 0x100   :  { %v1591_v61 = vpop.f32.mrf.mxu0  ;;  %v270_v38 = vadd.f32 %v981_v25, %v1610_v15 }
 0x101   :  { %v983_v62 = vpop.f32.mrf.mxu1 }
 0x102   :  { %v1593_v63 = vpop.f32.mrf.mxu0  ;;  %v984_v21 = vadd.f32 %v983_v62, %v982_v60  ;;  %v312_v62 = vmul.f32 0.01, %v270_v38  ;;  %vm302_vm8 = vcmp.ge.f32.partialorder %v270_v38, 0.0 }
 0x103   :  { %v985_v0 = vpop.f32.mrf.mxu1 }
 0x104   :  { %v1595_v1 = vpop.f32.mrf.mxu0  ;;  %v275_v30 = vadd.f32 %v984_v21, %v1610_v15  ;;  %v309_v21 = vmul.f32 0.01, %v255_v42 }
 0x105   :  { %v986_v2 = vpop.f32.mrf.mxu1 }
 0x106   :  { %v1597_v4 = vpop.f32.mrf.mxu0  ;;  %v987_v17 = vadd.f32 %v986_v2, %v985_v0  ;;  %v313_v56 = vmul.f32 0.01, %v275_v30  ;;  %vm303_vm7 = vcmp.ge.f32.partialorder %v275_v30, 0.0 }
 0x107   :  { %v988_v5 = vpop.f32.mrf.mxu1 }
 0x108   :  { %v1599_v6 = vpop.f32.mrf.mxu0  ;;  %v280_v26 = vadd.f32 %v987_v17, %v1610_v15 }
 0x109   :  { %v989_v7 = vpop.f32.mrf.mxu1 }
 0x10a   :  { %v1601_v8 = vpop.f32.mrf.mxu0  ;;  %v990_v12 = vadd.f32 %v989_v7, %v988_v5  ;;  %v314_v40 = vmul.f32 0.01, %v280_v26  ;;  %vm304_vm6 = vcmp.ge.f32.partialorder %v280_v26, 0.0  ;;  %v323_v7 = vsel %vm303_vm7, %v275_v30, %v313_v56 }
 0x10b   :  { %v991_v9 = vpop.f32.mrf.mxu1 }
 0x10c   :  { %v1603_v10 = vpop.f32.mrf.mxu0  ;;  %v285_v22 = vadd.f32 %v990_v12, %v1610_v15  ;;  %v324_v2 = vsel %vm304_vm6, %v280_v26, %v314_v40  ;;  %v322_v12 = vsel %vm302_vm8, %v270_v38, %v312_v62  ;;  %v1055_v40 = vadd.f32 %v1597_v4, %v1595_v1 }
 0x10d   :  { %v992_v11 = vpop.f32.mrf.mxu1  ;;  %v1049_v4 = vadd.f32 %v1589_v59, %v1587_v57 }
 0x10e   :  { %v993_v13 = vadd.f32 %v992_v11, %v991_v9  ;;  %v1605_v14 = vpop.f32.mrf.mxu0  ;;  %v315_v31 = vmul.f32 0.01, %v285_v22  ;;  %vm305_vm5 = vcmp.ge.f32.partialorder %v285_v22, 0.0  ;;  %v467_v56 = vadd.f32 %v1055_v40, %v1610_v15 }
 0x10f   :  { %v994_v16 = vpop.f32.mrf.mxu1  ;;  %v457_v57 = vadd.f32 %v1049_v4, %v1610_v15 }
 0x110   :  { %v290_v18 = vadd.f32 %v993_v13, %v1610_v15  ;;  %v1613_v19 = vpop.f32.mrf.mxu0  ;;  %v325_v60 = vsel %vm305_vm5, %v285_v22, %v315_v31  ;;  %v321_v22 = vsel %vm301_vm9, %v265_v54, %v311_v44  ;;  %v529_v59 = vmul.f32 0.01, %v467_v56 }
 0x111   :  { %v995_v20 = vpop.f32.mrf.mxu1  ;;  %vm513_vm5 = vcmp.ge.f32.partialorder %v467_v56, 0.0  ;;  %v527_v47 = vmul.f32 0.01, %v457_v57  ;;  %vm511_vm7 = vcmp.ge.f32.partialorder %v457_v57, 0.0 }
 0x112   :  { %v996_v23 = vadd.f32 %v995_v20, %v994_v16  ;;  %v1616_v24 = vpop.f32.mrf.mxu0  ;;  %v316_v27 = vmul.f32 0.01, %v290_v18  ;;  %vm306_vm3 = vcmp.ge.f32.partialorder %v290_v18, 0.0 }
 0x114   :  { %v295_v28 = vadd.f32 %v996_v23, %v1610_v15  ;;  %v1065_v29 = vpop.f32.mrf.mxu0  ;;  %v326_v48 = vsel %vm306_vm3, %v290_v18, %v316_v27  ;;  %v1064_v23 = vadd.f32 %v1616_v24, %v1613_v19  ;;  %v308_v27 = vmul.f32 0.01, %v250_v37 }
 0x115   :  { %v319_v19 = vsel %vm299_vm11, %v255_v42, %v309_v21  ;;  %v1058_v24 = vadd.f32 %v1601_v8, %v1599_v6  ;;  %v437_v42 = vadd.f32 %v1573_v41, %v1610_v15 }
 0x116   :  { %v317_v32 = vmul.f32 0.01, %v295_v28  ;;  %v1066_v34 = vpop.f32.mrf.mxu0  ;;  %vm307_vm4 = vcmp.ge.f32.partialorder %v295_v28, 0.0  ;;  %v318_v38 = vsel %vm298_vm12, %v250_v37, %v308_v27  ;;  %v1225_v27 = vmov 1966171168  }
 0x117   :  { %v1067_v17 = vadd.f32 %v1066_v34, %v1065_v29  ;;  %v320_v29 = vsel %vm300_vm10, %v260_v49, %v310_v39  ;;  %v545_v49 = vsel %vm513_vm5, %v467_v56, %v529_v59  ;;  %v523_v37 = vmul.f32 0.01, %v437_v42 }
 0x118   :  { %v1068_v43 = vpop.f32.mrf.mxu0  ;;  %v327_v45 = vsel %vm307_vm4, %v295_v28, %v317_v32  ;;  %v1061_v28 = vadd.f32 %v1605_v14, %v1603_v10  ;;  %v482_v10 = vadd.f32 %v1064_v23, %v1610_v15  ;;  %vm507_vm11 = vcmp.ge.f32.partialorder %v437_v42, 0.0 }
 0x119   :  { %1117 = vmatpush3.msra.mxu1 %v327_v45  ;;  %v487_v30 = vadd.f32 %v1067_v17, %v1610_v15  ;;  %v1052_v45 = vadd.f32 %v1593_v63, %v1591_v61  ;;  %v1046_v61 = vadd.f32 %v1585_v55, %v1583_v53  ;;  %v447_v55 = vadd.f32 %v1581_v51, %v1610_v15 }
 0x11a   :  { %v1069_v58 = vpop.f32.mrf.mxu0  ;;  %1118 = vmatprep.subr.mxu1 %v1223_v3  ;;  %v477_v6 = vadd.f32 %v1061_v28, %v1610_v15  ;;  %v532_v50 = vmul.f32 0.01, %v482_v10  ;;  %vm516_vm2 = vcmp.ge.f32.partialorder %v482_v10, 0.0  ;;  %v543_v51 = vsel %vm511_vm7, %v457_v57, %v527_v47 }
 0x11b   :  { %1119 = vmatpush3.msra.mxu1 %v326_v48  ;;  %v1070_v13 = vadd.f32 %v1069_v58, %v1068_v43  ;;  %v533_v8 = vmul.f32 0.01, %v487_v30  ;;  %vm517_vm1 = vcmp.ge.f32.partialorder %v487_v30, 0.0  ;;  %v472_v48 = vadd.f32 %v1058_v24, %v1610_v15 }
 0x11c   :  { %v1071_v0 = vpop.f32.mrf.mxu0  ;;  %1120 = vmatprep.subr.mxu1 %v1223_v3  ;;  %v531_v58 = vmul.f32 0.01, %v477_v6  ;;  %vm515_vm3 = vcmp.ge.f32.partialorder %v477_v6, 0.0  ;;  %v462_v63 = vadd.f32 %v1052_v45, %v1610_v15  ;;  %v548_v54 = vsel %vm516_vm2, %v482_v10, %v532_v50 }
 0x11d   :  { %1121 = vmatpush3.msra.mxu1 %v325_v60  ;;  %v492_v25 = vadd.f32 %v1070_v13, %v1610_v15  ;;  %v549_v60 = vsel %vm517_vm1, %v487_v30, %v533_v8  ;;  %v530_v52 = vmul.f32 0.01, %v472_v48  ;;  %vm514_vm4 = vcmp.ge.f32.partialorder %v472_v48, 0.0 }
 0x11e   :  { %v1072_v5 = vpop.f32.mrf.mxu0  ;;  %1122 = vmatprep.subr.mxu1 %v1223_v3  ;;  %v547_v62 = vsel %vm515_vm3, %v477_v6, %v531_v58  ;;  %vm512_vm6 = vcmp.ge.f32.partialorder %v462_v63, 0.0  ;;  %v525_v44 = vmul.f32 0.01, %v447_v55  ;;  %vm509_vm9 = vcmp.ge.f32.partialorder %v447_v55, 0.0 }
 0x11f   :  { %v1073_v9 = vadd.f32 %v1072_v5, %v1071_v0  ;;  %1123 = vmatpush3.msra.mxu1 %v324_v2  ;;  %v534_v14 = vmul.f32 0.01, %v492_v25  ;;  %vm518_vm0 = vcmp.ge.f32.partialorder %v492_v25, 0.0  ;;  %v452_v0 = vadd.f32 %v1046_v61, %v1610_v15 }
 0x120   :  { %v1074_v11 = vpop.f32.mrf.mxu0  ;;  %1124 = vmatprep.subr.mxu1 %v1223_v3  ;;  %v528_v2 = vmul.f32 0.01, %v462_v63  ;;  %v546_v53 = vsel %vm514_vm4, %v472_v48, %v530_v52  ;;  %v442_v5 = vadd.f32 %v1579_v46, %v1610_v15  ;;  %v427_v13 = vadd.f32 %v1565_v33, %v1610_v15 }
 0x121   :  { %1125 = vmatpush3.msra.mxu1 %v323_v7  ;;  %v497_v18 = vadd.f32 %v1073_v9, %v1610_v15  ;;  %v550_v1 = vsel %vm518_vm0, %v492_v25, %v534_v14  ;;  %v526_v7 = vmul.f32 0.01, %v452_v0  ;;  %vm510_vm8 = vcmp.ge.f32.partialorder %v452_v0, 0.0 }
 0x122   :  { %v1075_v16 = vpop.f32.mrf.mxu0  ;;  %1126 = vmatprep.subr.mxu1 %v1223_v3  ;;  %v544_v9 = vsel %vm512_vm6, %v462_v63, %v528_v2  ;;  %vm508_vm10 = vcmp.ge.f32.partialorder %v442_v5, 0.0  ;;  %v541_v41 = vsel %vm509_vm9, %v447_v55, %v525_v44  ;;  %v539_v17 = vsel %vm507_vm11, %v437_v42, %v523_v37 }
 0x123   :  { %v1076_v20 = vadd.f32 %v1075_v16, %v1074_v11  ;;  %1127 = vmatpush3.msra.mxu1 %v322_v12  ;;  %v535_v31 = vmul.f32 0.01, %v497_v18  ;;  %vm519_vm14 = vcmp.ge.f32.partialorder %v497_v18, 0.0  ;;  %v432_v11 = vadd.f32 %v1567_v36, %v1610_v15 }
 0x124   :  { %1128 = vmatprep.subr.mxu1 %v1223_v3  ;;  %v524_v12 = vmul.f32 0.01, %v442_v5  ;;  %v542_v46 = vsel %vm510_vm8, %v452_v0, %v526_v7  ;;  %v521_v36 = vmul.f32 0.01, %v427_v13  ;;  %v702_v28 = vunpack.c.l.s4 %v1225_v27 }
 0x125   :  { %v502_v26 = vadd.f32 %v1076_v20, %v1610_v15  ;;  %1129 = vmatpush3.msra.mxu1 %v321_v22  ;;  %v551_v43 = vsel %vm519_vm14, %v497_v18, %v535_v31  ;;  %v522_v39 = vmul.f32 0.01, %v432_v11  ;;  %vm506_vm12 = vcmp.ge.f32.partialorder %v432_v11, 0.0  ;;  %v628_v15 = vld [vmem:[%s1730_s8] sm:$0xff]  ;;  %s1226_s8 = smov [#allocation2]  }
 0x126   :  { %1130 = vmatprep.subr.mxu1 %v1223_v3  ;;  %v540_v16 = vsel %vm508_vm10, %v442_v5, %v524_v12  ;;  %v704_v20 = vlaneseq  ;;  %vm797_vm14 = vcmask 520192   ;;  %s904_s15 = sshll.u32 %s1226_s8, 4  ;;  %s905_s15 = int_to_ptr.vmem [resolvable:$true] %s904_s15 }
 0x127   :  { %v536_v32 = vmul.f32 0.01, %v502_v26  ;;  %1131 = vmatpush3.msra.mxu1 %v320_v29  ;;  %vm520_vm13 = vcmp.ge.f32.partialorder %v502_v26, 0.0  ;;  %v538_v33 = vsel %vm506_vm12, %v432_v11, %v522_v39  ;;  %v703_v29 = vunpack.c.0.s8 %v702_v28  ;;  %s1179_s16 = scalar_lea.vmem %s905_s15, 128  ;;  %p1184_p1 = scmp.lt.s32.totalorder %s905_s15, %s905_s15 }
 0x128   :  { %1132 = vmatprep.subr.mxu1 %v1223_v3  ;;  %v705_v21 = vshrl.u32 %v704_v20, 7  ;;  %v848_v22 = vand.u32 127, %v704_v20  ;;  %p1180_p0 = scmp.ne.s32.totalorder %s905_s15, %s1179_s16  ;;  %p1185_p2 = scmp.lt.s32.totalorder %s1179_s16, %s1179_s16 }
 0x129   :  { %1133 = vmatpush3.msra.mxu1 %v319_v19  ;;  %v552_v34 = vsel %vm520_vm13, %v502_v26, %v536_v32  ;;  %vm505_vm13 = vcmp.ge.f32.partialorder %v427_v13, 0.0 }
 0x12a   :  { %1140 = vmatpush3.msra.mxu0 %v552_v34  ;;  %1134 = vmatprep.subr.mxu1 %v1223_v3  ;;  %v537_v18 = vsel %vm505_vm13, %v427_v13, %v521_v36  ;;  %v1698_v23 = vsub.s32 %v848_v22, %v705_v21  ;;  %v706_v30 = vsub.s32 %v703_v29, %v705_v21  ;;  %v751_v24 = vsub.s32 0, %v705_v21  ;;  %p1186_p3 = por %p1185_p2, %p1184_p1 }
 0x12b   :  { %1141 = vmatprep.subr.mxu0 %v1223_v3  ;;  %1135 = vmatpush3.msra.mxu1 %v318_v38 }
 0x12c   :  { %1142 = vmatpush3.msra.mxu0 %v551_v43  ;;  %1137 = vmatmul.mubr.msk.f32.vlgmr.msra.gmra.mxu1 %vm554_vm15, %v553_v35  ;;  %p1187_p4 = pnand %p1186_p3, %p1180_p0 }
 0x12d   :  { %1143 = vmatprep.subr.mxu0 %v1223_v3 }
 0x12e   :  { %1144 = vmatpush3.msra.mxu0 %v550_v1 }
 0x12f   :  { %1145 = vmatprep.subr.mxu0 %v1223_v3 }
 0x130   :  { %1146 = vmatpush3.msra.mxu0 %v549_v60 }
 0x131   :  { %1147 = vmatprep.subr.mxu0 %v1223_v3 }
 0x132   :  { %1148 = vmatpush3.msra.mxu0 %v548_v54 }
 0x133   :  { %1149 = vmatprep.subr.mxu0 %v1223_v3 }
 0x134   :  { %1150 = vmatpush3.msra.mxu0 %v547_v62 }
 0x135   :  { %1151 = vmatprep.subr.mxu0 %v1223_v3 }
 0x136   :  { %1152 = vmatpush3.msra.mxu0 %v546_v53 }
 0x137   :  { %1153 = vmatprep.subr.mxu0 %v1223_v3 }
 0x138   :  { %1154 = vmatpush3.msra.mxu0 %v545_v49 }
 0x139   :  { %1155 = vmatprep.subr.mxu0 %v1223_v3 }
 0x13a   :  { %1156 = vmatpush3.msra.mxu0 %v544_v9 }
 0x13b   :  { %1157 = vmatprep.subr.mxu0 %v1223_v3 }
 0x13c   :  { %1158 = vmatpush3.msra.mxu0 %v543_v51 }
 0x13d   :  { %1159 = vmatprep.subr.mxu0 %v1223_v3 }
 0x13e   :  { %1160 = vmatpush3.msra.mxu0 %v542_v46 }
 0x13f   :  { %1161 = vmatprep.subr.mxu0 %v1223_v3 }
 0x140   :  { %1162 = vmatpush3.msra.mxu0 %v541_v41 }
 0x141   :  { %1163 = vmatprep.subr.mxu0 %v1223_v3 }
 0x142   :  { %1164 = vmatpush3.msra.mxu0 %v540_v16 }
 0x143   :  { %1165 = vmatprep.subr.mxu0 %v1223_v3 }
 0x144   :  { %1166 = vmatpush3.msra.mxu0 %v539_v17 }
 0x145   :  { %1167 = vmatprep.subr.mxu0 %v1223_v3 }
 0x146   :  { %1168 = vmatpush3.msra.mxu0 %v538_v33 }
 0x147   :  { %1169 = vmatprep.subr.mxu0 %v1223_v3 }
 0x148   :  { %1170 = vmatpush3.msra.mxu0 %v537_v18 }
 0x149   :  { %1172 = vmatmul.mubr.f32.vlgmr.msra.gmra.mxu0 %v628_v15 }
 0x1ec   :  { %v624_v25 = vpop.f32.mrf.mxu1 }
 0x1ee   :  { %v1138_v26 = vpop.f32.mrf.mxu1 }
 0x209   :  { %v695_v31 = vpop.f32.mrf.mxu0 }
 0x20a   :  { %v700_v32 = vcombine.high %v695_v31, %v695_v31  ;;  %v707_v19 = vrot.slane %v695_v31, %v706_v30 }
 0x20b   :  { %v1173_v10 = vpop.f32.mrf.mxu0 }
 0x20c   :  { %v714_v3 = vrot.slane %v700_v32, %v706_v30  ;;  %v715_v14 = vcombine.high %v707_v19, %v707_v19  ;;  %v723_v34 = vrot.slane %v707_v19, %v706_v30 }
 0x20e   :  { %v716_v35 = vcombine.high %v714_v3, %v714_v3  ;;  %v730_v38 = vrot.slane %v714_v3, %v706_v30  ;;  %v737_v40 = vrot.slane %v715_v14, %v706_v30  ;;  %v752_v6 = vrot.slane %v723_v34, %v751_v24 }
 0x20f   :  { %v745_v8 = vcombine.high %v723_v34, %v723_v34 }
 0x210   :  { %v789_v43 = vsub.f32 %v624_v25, %v752_v6  ;;  %v756_v45 = vrot.slane %v737_v40, %v751_v24  ;;  %v747_v48 = vcombine.high %v737_v40, %v737_v40  ;;  %v768_v1 = vrot.slane %v730_v38, %v751_v24 }
 0x211   :  { %v760_v50 = vrot.slane %v745_v8, %v751_v24  ;;  %v744_v4 = vrot.slane %v716_v35, %v706_v30  ;;  %v746_v61 = vcombine.high %v730_v38, %v730_v38 }
 0x212   :  { %v798_v56 = vsel %vm797_vm14, %v789_v43, 0.0  ;;  %v790_v58 = vsub.f32 %v624_v25, %v756_v45  ;;  %v764_v60 = vrot.slane %v747_v48, %v751_v24  ;;  %v793_v0 = vsub.f32 %v624_v25, %v768_v1 }
 0x213   :  { %799 = vadd.xlane.f32.xlu0 %v798_v56  ;;  %v791_v63 = vsub.f32 %v624_v25, %v760_v50  ;;  %v772_v57 = vrot.slane %v744_v4, %v751_v24  ;;  %v748_v59 = vcombine.high %v744_v4, %v744_v4  ;;  %v776_v2 = vrot.slane %v746_v61, %v751_v24 }
 0x214   :  { %v792_v54 = vsub.f32 %v624_v25, %v764_v60  ;;  %v801_v62 = vsel %vm797_vm14, %v790_v58, 0.0  ;;  %v810_v49 = vsel %vm797_vm14, %v793_v0, 0.0 }
 0x215   :  { %v804_v52 = vsel %vm797_vm14, %v791_v63, 0.0  ;;  %v794_v55 = vsub.f32 %v624_v25, %v772_v57  ;;  %v780_v47 = vrot.slane %v748_v59, %v751_v24  ;;  %v795_v5 = vsub.f32 %v624_v25, %v776_v2 }
 0x216   :  { %805 = vadd.xlane.f32.xlu1 %v804_v52  ;;  %v807_v53 = vsel %vm797_vm14, %v792_v54, 0.0 }
 0x217   :  { %802 = vadd.xlane.f32.xlu0 %v801_v62  ;;  %v813_v7 = vsel %vm797_vm14, %v794_v55, 0.0  ;;  %v796_v9 = vsub.f32 %v624_v25, %v780_v47  ;;  %v816_v42 = vsel %vm797_vm14, %v795_v5, 0.0 }
 0x219   :  { %v819_v44 = vsel %vm797_vm14, %v796_v9, 0.0 }
 0x21a   :  { %808 = vadd.xlane.f32.xlu1 %v807_v53 }
 0x21b   :  { %811 = vadd.xlane.f32.xlu0 %v810_v49 }
 0x21e   :  { %814 = vadd.xlane.f32.xlu1 %v813_v7 }
 0x21f   :  { %817 = vadd.xlane.f32.xlu0 %v816_v42 }
 0x222   :  { %820 = vadd.xlane.f32.xlu1 %v819_v44 }
 0x223   :  { %1190 = shalt.err (!%p1187_p4)
}
 0x224   :  { %907 = dma.vmem_to_hbm [thread:$0]  %s905_s15, 128, %s1731_s9, [#allocation3]   ;;  %vm881_vm15 = vcmask 1041409   ;;  %vm883_vm0 = vcmask 1042434   ;;  %vm885_vm1 = vcmask 1043459   ;;  %vm887_vm2 = vcmask 1044484  }
 0x225   :  { %vm889_vm3 = vcmask 1045509   ;;  %vm891_vm4 = vcmask 1046534   ;;  %s1227_s9 = smov [#allocation4]   ;;  %vm893_vm5 = vcmask 1047559   ;;  %vm896_vm6 = vcmask 39936  }
 0x226   :  { %s914_s19 = sshll.u32 %s1227_s9, 4  ;;  %s915_s19 = int_to_ptr.vmem [resolvable:$true] %s914_s19 }
 0x227   :  { %s1199_s20 = scalar_lea.vmem %s915_s19, 128  ;;  %p1204_p6 = scmp.lt.s32.totalorder %s915_s19, %s915_s19 }
 0x228   :  { %p1200_p5 = scmp.ne.s32.totalorder %s915_s19, %s1199_s20  ;;  %p1205_p7 = scmp.lt.s32.totalorder %s1199_s20, %s1199_s20 }
 0x22a   :  { %p1206_p8 = por %p1205_p7, %p1204_p6 }
 0x22c   :  { %p1207_p9 = pnand %p1206_p8, %p1200_p5 }
 0x29c   :  { %v800_v51 = vpop.xlane.xlu0 %799 }
 0x29d   :  { %v823_v11 = vmul.f32 0.015625, %v800_v51 }
 0x29f   :  { %v806_v12 = vpop.xlane.xlu1 %805  ;;  %v831_v37 = vmul.f32 %v823_v11, %v823_v11 }
 0x2a0   :  { %v825_v46 = vmul.f32 0.015625, %v806_v12  ;;  %v803_v13 = vpop.xlane.xlu0 %802 }
 0x2a1   :  { %v824_v41 = vmul.f32 0.015625, %v803_v13  ;;  %v852_v15 = vrot.slane %v831_v37, %v1698_v23 }
 0x2a2   :  { %v833_v39 = vmul.f32 %v825_v46, %v825_v46 }
 0x2a3   :  { %v832_v16 = vmul.f32 %v824_v41, %v824_v41  ;;  %v809_v36 = vpop.xlane.xlu1 %808 }
 0x2a4   :  { %v826_v17 = vmul.f32 0.015625, %v809_v36  ;;  %v812_v33 = vpop.xlane.xlu0 %811  ;;  %v860_v21 = vrot.slane %v833_v39, %v1698_v23 }
 0x2a5   :  { %v856_v18 = vrot.slane %v832_v16, %v1698_v23  ;;  %v827_v20 = vmul.f32 0.015625, %v812_v33 }
 0x2a6   :  { %v834_v22 = vmul.f32 %v826_v17, %v826_v17 }
 0x2a7   :  { %v882_v25 = vsel %vm881_vm15, %v856_v18, %v852_v15  ;;  %v835_v26 = vmul.f32 %v827_v20, %v827_v20  ;;  %v815_v27 = vpop.xlane.xlu1 %814 }
 0x2a8   :  { %v864_v28 = vrot.slane %v834_v22, %v1698_v23  ;;  %v884_v29 = vsel %vm883_vm0, %v860_v21, %v882_v25  ;;  %v828_v30 = vmul.f32 0.015625, %v815_v27  ;;  %v818_v31 = vpop.xlane.xlu0 %817 }
 0x2a9   :  { %v868_v32 = vrot.slane %v835_v26, %v1698_v23  ;;  %v829_v19 = vmul.f32 0.015625, %v818_v31 }
 0x2aa   :  { %v886_v24 = vsel %vm885_vm1, %v864_v28, %v884_v29  ;;  %v836_v10 = vmul.f32 %v828_v30, %v828_v30 }
 0x2ab   :  { %v888_v3 = vsel %vm887_vm2, %v868_v32, %v886_v24  ;;  %v837_v14 = vmul.f32 %v829_v19, %v829_v19  ;;  %v821_v34 = vpop.xlane.xlu1 %820 }
 0x2ac   :  { %v872_v35 = vrot.slane %v836_v10, %v1698_v23  ;;  %v830_v38 = vmul.f32 0.015625, %v821_v34 }
 0x2ad   :  { %v876_v40 = vrot.slane %v837_v14, %v1698_v23 }
 0x2ae   :  { %v838_v6 = vmul.f32 %v830_v38, %v830_v38  ;;  %v890_v8 = vsel %vm889_vm3, %v872_v35, %v888_v3 }
 0x2af   :  { %v892_v43 = vsel %vm891_vm4, %v876_v40, %v890_v8 }
 0x2b0   :  { %v880_v45 = vrot.slane %v838_v6, %v1698_v23 }
 0x2b2   :  { %v894_v48 = vsel %vm893_vm5, %v880_v45, %v892_v43 }
 0x2b3   :  { %897 = vst.msk [vmem:[#allocation4] sm:$0xff] %vm896_vm6, %v894_v48 }
 0x2b4   :  { %1210 = shalt.err (!%p1207_p9)
}
 0x2b5   :  { %917 = dma.vmem_to_hbm [thread:$0]  %s915_s19, 128, %s1732_s10, [#allocation5]  }
 0x2b6   :  { %1219 = dma.done.wait [#allocation3], 128  }
 0x2b7   :  { %1220 = vsyncadd [#allocation3], 4294967168 }
 0x2b8   :  { %1221 = dma.done.wait [#allocation5], 128  }
 0x2b9   :  { %1222 = vsyncadd [#allocation5], 4294967168 }
 0x2ba   :  { %924 = vsyncpa [#allocation3], 1 }
 0x2bb   :  { %925 = vsyncpa [#allocation5], 1 }

</bundles_post_ra>
